<compile_context>
chip_gen: v7x
topology: tpu7x:2x2x1
jax: 0.10.0
libtpu: 0.0.40
codegen_flags: <defaults>
</compile_context>

<pallas_src>
import jax
import jax.numpy as jnp
from jax.experimental import pallas as pl
from jax.experimental.pallas import tpu as pltpu

HIDDEN = 100           # true hidden size
IN_FEAT = 4
OUT_FEAT = 4
GPAD = 128             # per-gate lane padding (i, g, o each padded 100 -> 128)
HPAD = 128             # padded hidden width fed into the next matmul
NGATES = 3             # i, g, o (f-gate dropped: c_prev == 0)
GATE_IDX = (0, 2, 3)   # positions of i, g, o in PyTorch's (i, f, g, o) stacking


def _round_up(n, m):
    return (n + m - 1) // m * m


def _device_kind():
    try:
        return jax.devices()[0].device_kind.lower()
    except Exception:  # pragma: no cover - defensive only
        return ""


def _igo_to_h(gates):
    """gates: (tb, 3*GPAD) -> h: (tb, GPAD), same dtype.  128-aligned slices only.

    Padded lanes: gates == 0 -> sigmoid(0)*tanh(sigmoid(0)*tanh(0)) == 0 exactly,
    in both f32 and bf16.
    """
    i = jax.nn.sigmoid(gates[:, 0 * GPAD:1 * GPAD])
    g = jnp.tanh(gates[:, 1 * GPAD:2 * GPAD])
    o = jax.nn.sigmoid(gates[:, 2 * GPAD:3 * GPAD])
    c = i * g                      # f-gate term vanishes (c_prev == 0)
    return o * jnp.tanh(c)


def make_kamp_rnn_kernel(act_dtype):
    """act_dtype: dtype for gate activations / elementwise products.

    bf16 on v6e/v7x (native bf16 VPU/EUP), f32 on v5e and older.
    """

    def kernel(x_ref, wih0_ref, b0_ref, wih1_ref, b1_ref, wfc_ref, bfc_ref,
               out_ref):
        x = x_ref[...]                                   # (tb, 4) f32
        w0 = wih0_ref[...]                               # (4, 3*GPAD) f32

        # ---- LSTM layer 0 (K=4): four broadcast multiply-adds on the VPU ----
        gates0 = b0_ref[...] + x[:, 0:1] * w0[0:1, :]
        for d in range(1, IN_FEAT):
            gates0 = gates0 + x[:, d:d + 1] * w0[d:d + 1, :]
        h0 = _igo_to_h(gates0.astype(act_dtype))         # (tb, GPAD), pads == 0

        # ---- LSTM layer 1: bf16 MXU matmul, f32 accumulate ----
        gates1 = jnp.dot(h0.astype(jnp.bfloat16), wih1_ref[...],
                         preferred_element_type=jnp.float32) + b1_ref[...]
        h1 = _igo_to_h(gates1.astype(act_dtype))         # (tb, HPAD), pads == 0

        # ---- Final linear: (tb,128)@(128,4) bf16 MXU, f32 accumulate.
        # Stored as a compact (tb, 4) block -> 16 B/row HBM writeback.
        out = jnp.dot(h1.astype(jnp.bfloat16), wfc_ref[...],
                      preferred_element_type=jnp.float32) + bfc_ref[...]
        out_ref[...] = out.astype(out_ref.dtype)

    return kernel


def _pack_lstm_layer(w_ih, b_ih, b_hh, d_in_pad, w_dtype):
    """Pack PyTorch (4H, Din) LSTM weights / biases into lane-padded i|g|o form.

    Returns w_packed: (d_in_pad, 3*GPAD) in w_dtype, b_packed: (1, 3*GPAD) f32.
    Padded rows/columns/bias lanes are zero so padded h-lanes stay exactly zero.
    """
    d_in = w_ih.shape[1]
    bias = (b_ih + b_hh).astype(jnp.float32)
    w_packed = jnp.zeros((d_in_pad, NGATES * GPAD), jnp.float32)
    b_packed = jnp.zeros((1, NGATES * GPAD), jnp.float32)
    for k, g in enumerate(GATE_IDX):
        blk = w_ih[g * HIDDEN:(g + 1) * HIDDEN, :].astype(jnp.float32).T  # (Din, H)
        w_packed = w_packed.at[:d_in, k * GPAD:k * GPAD + HIDDEN].set(blk)
        b_packed = b_packed.at[0, k * GPAD:k * GPAD + HIDDEN].set(
            bias[g * HIDDEN:(g + 1) * HIDDEN])
    return w_packed.astype(w_dtype), b_packed


def kamp_rnn_forward(x, params, *, tile_b=2048):
    """x: (B, 4) float32.  Returns (B, 4) float32."""
    B = x.shape[0]
    x = x.astype(jnp.float32)

    kind = _device_kind()
    is_v7 = ("v7" in kind) or ("7x" in kind)
    bf16_act = is_v7 or ("v6" in kind)               # bf16 VPU/EUP chips only
    act_dtype = jnp.bfloat16 if bf16_act else jnp.float32

    # Batch tiling: multiple of 8 sublanes; default 2048 rows/step amortizes
    # the ~0.35 us/grid-step overhead.  Working set (resident weights ~100 KiB
    # + double-buffered x/out tiles + gate temporaries) stays well inside the
    # raised scoped-VMEM budget on every generation.
    tb = min(tile_b, _round_up(B, 8))
    tb = _round_up(tb, 8)
    b_pad = _round_up(B, tb)
    if b_pad != B:
        x = jnp.pad(x, ((0, b_pad - B), (0, 0)))
    grid = (b_pad // tb,)

    # ---- Pack weights (f-gate dropped, 128-lane aligned gate groups) ----
    # Layer 0: K=4, stays f32 (consumed by the VPU FMA path).
    wih0, b0 = _pack_lstm_layer(params["w_ih_l0"], params["b_ih_l0"],
                                params["b_hh_l0"], IN_FEAT, jnp.float32)
    # Layer 1: K=128 (padded), bf16 for native-rate MXU.
    wih1, b1 = _pack_lstm_layer(params["w_ih_l1"], params["b_ih_l1"],
                                params["b_hh_l1"], HPAD, jnp.bfloat16)
    # FC: (100, 4) -> zero-padded (128, 4) bf16; compact 4-wide output.
    wfc = jnp.zeros((HPAD, OUT_FEAT), jnp.float32)
    wfc = wfc.at[:HIDDEN, :].set(params["w_fc"].astype(jnp.float32).T)
    wfc = wfc.astype(jnp.bfloat16)
    bfc = params["b_fc"].astype(jnp.float32).reshape(1, OUT_FEAT)

    # ---- Cost estimate (whole call), consistent with the compact output ----
    flops = 2 * b_pad * (IN_FEAT * NGATES * GPAD
                         + HPAD * NGATES * GPAD
                         + HPAD * OUT_FEAT)
    transcendentals = 8 * b_pad * GPAD               # 4 per lane per layer
    bytes_accessed = (b_pad * IN_FEAT * 4            # x in
                      + b_pad * OUT_FEAT * 4         # compact out
                      + (IN_FEAT * NGATES * GPAD + 2 * NGATES * GPAD
                         + OUT_FEAT) * 4             # f32 weights / biases
                      + (HPAD * NGATES * GPAD + HPAD * OUT_FEAT) * 2)  # bf16 w

    # Only CORE_PARALLEL actually splits a grid axis across v7x's two TCs;
    # plain "parallel" elsewhere (near-zero codegen effect, but harmless).
    dim_sem = (pltpu.CORE_PARALLEL,) if is_v7 else ("parallel",)
    # Raise scoped VMEM off-v7x (v5e defaults to 16 MiB); keep 32 MiB on v7x
    # (64 MiB physical per TC).
    vmem_limit = (32 << 20) if is_v7 else (64 << 20)

    const_map = lambda i: (0, 0)
    out_pad = pl.pallas_call(
        make_kamp_rnn_kernel(act_dtype),
        out_shape=jax.ShapeDtypeStruct((b_pad, OUT_FEAT), jnp.float32),
        grid=grid,
        in_specs=[
            pl.BlockSpec((tb, IN_FEAT), lambda i: (i, 0)),          # x tile
            pl.BlockSpec((IN_FEAT, NGATES * GPAD), const_map),      # wih0 (resident)
            pl.BlockSpec((1, NGATES * GPAD), const_map),            # b0
            pl.BlockSpec((HPAD, NGATES * GPAD), const_map),         # wih1 (resident)
            pl.BlockSpec((1, NGATES * GPAD), const_map),            # b1
            pl.BlockSpec((HPAD, OUT_FEAT), const_map),              # wfc (resident)
            pl.BlockSpec((1, OUT_FEAT), const_map),                 # bfc
        ],
        out_specs=pl.BlockSpec((tb, OUT_FEAT), lambda i: (i, 0)),   # compact out
        compiler_params=pltpu.CompilerParams(
            dimension_semantics=dim_sem,
            vmem_limit_bytes=vmem_limit),
        cost_estimate=pl.CostEstimate(
            flops=flops, transcendentals=transcendentals,
            bytes_accessed=bytes_accessed),
    )(x, wih0, b0, wih1, b1, wfc, bfc)

    if b_pad != B:
        out_pad = out_pad[:B]
    return out_pad


def init_params(key):
    """Deterministic init mirroring PyTorch default shapes/ranges."""
    ks = jax.random.split(key, 10)
    bound = 1.0 / jnp.sqrt(jnp.float32(HIDDEN))

    def u(k, shape):
        return jax.random.uniform(k, shape, jnp.float32, -bound, bound)

    return {
        # layer 0
        "w_ih_l0": u(ks[0], (4 * HIDDEN, IN_FEAT)),
        "w_hh_l0": u(ks[1], (4 * HIDDEN, HIDDEN)),   # unused (h0 == 0), kept for parity
        "b_ih_l0": u(ks[2], (4 * HIDDEN,)),
        "b_hh_l0": u(ks[3], (4 * HIDDEN,)),
        # layer 1
        "w_ih_l1": u(ks[4], (4 * HIDDEN, HIDDEN)),
        "w_hh_l1": u(ks[5], (4 * HIDDEN, HIDDEN)),   # unused (h0 == 0), kept for parity
        "b_ih_l1": u(ks[6], (4 * HIDDEN,)),
        "b_hh_l1": u(ks[7], (4 * HIDDEN,)),
        # fc
        "w_fc": u(ks[8], (OUT_FEAT, HIDDEN)),
        "b_fc": u(ks[9], (OUT_FEAT,)),
    }


def reference_forward(x, params):
    """Pure-JAX f32 reference of the same math."""
    def cell(xin, w_ih, b_ih, b_hh):
        gates = xin @ w_ih.T + b_ih + b_hh
        i, f, g, o = jnp.split(gates, 4, axis=-1)
        c = jax.nn.sigmoid(i) * jnp.tanh(g)
        return jax.nn.sigmoid(o) * jnp.tanh(c)

    h0 = cell(x, params["w_ih_l0"], params["b_ih_l0"], params["b_hh_l0"])
    h1 = cell(h0, params["w_ih_l1"], params["b_ih_l1"], params["b_hh_l1"])
    return h1 @ params["w_fc"].T + params["b_fc"]


if __name__ == "__main__":
    key = jax.random.PRNGKey(0)
    k_x, k_p = jax.random.split(key)

    B = 8
    x = jax.random.normal(k_x, (B, IN_FEAT), jnp.float32)
    params = init_params(k_p)

    out = kamp_rnn_forward(x, params)
    out = jax.block_until_ready(out)

    ref = reference_forward(x, params)
    assert out.shape == (B, OUT_FEAT)
    # bf16 weights (layer-1 / fc) and, on v6e/v7x, bf16 gate activations
    # -> compare with loosened tolerance.
    err = float(jnp.max(jnp.abs(out - ref)))
    assert jnp.allclose(out, ref, atol=3e-2, rtol=3e-2), f"max abs err {err}"

    print("KERNEL_OK")
</pallas_src>

<mosaic_0001>
module attributes {stable_mosaic.version = 11 : i64} {
  func.func @kernel(%arg0: i32, %arg1: memref<8x4xf32, #tpu.memory_space<vmem>>, %arg2: memref<4x384xf32, #tpu.memory_space<vmem>>, %arg3: memref<1x384xf32, #tpu.memory_space<vmem>>, %arg4: memref<128x384xbf16, #tpu.memory_space<vmem>>, %arg5: memref<1x384xf32, #tpu.memory_space<vmem>>, %arg6: memref<128x4xbf16, #tpu.memory_space<vmem>>, %arg7: memref<1x4xf32, #tpu.memory_space<vmem>>, %arg8: memref<8x4xf32, #tpu.memory_space<vmem>>) attributes {dimension_semantics = [#tpu.dimension_semantics<parallel>], iteration_bounds = array<i64: 1>, scalar_prefetch = 0 : i64, scratch_operands = 0 : i64, tpu.core_type = #tpu.core_type<tc>, window_params = [{transform_indices = @transform_0, window_bounds = array<i64: 8, 4>}, {pipeline_mode = #tpu.pipeline_mode<synchronous>, transform_indices = @transform_1, window_bounds = array<i64: 4, 384>}, {pipeline_mode = #tpu.pipeline_mode<synchronous>, transform_indices = @transform_2, window_bounds = array<i64: 1, 384>}, {pipeline_mode = #tpu.pipeline_mode<synchronous>, transform_indices = @transform_3, window_bounds = array<i64: 128, 384>}, {pipeline_mode = #tpu.pipeline_mode<synchronous>, transform_indices = @transform_4, window_bounds = array<i64: 1, 384>}, {pipeline_mode = #tpu.pipeline_mode<synchronous>, transform_indices = @transform_5, window_bounds = array<i64: 128, 4>}, {pipeline_mode = #tpu.pipeline_mode<synchronous>, transform_indices = @transform_6, window_bounds = array<i64: 1, 4>}, {transform_indices = @transform_7, window_bounds = array<i64: 8, 4>}]} {
    %c0 = arith.constant 0 : index
    %c0_0 = arith.constant 0 : index
    %0 = vector.load %arg1[%c0, %c0_0] : memref<8x4xf32, #tpu.memory_space<vmem>>, vector<8x4xf32>
    %c0_1 = arith.constant 0 : index
    %c0_2 = arith.constant 0 : index
    %1 = vector.load %arg2[%c0_1, %c0_2] : memref<4x384xf32, #tpu.memory_space<vmem>>, vector<4x384xf32>
    %c0_3 = arith.constant 0 : index
    %c0_4 = arith.constant 0 : index
    %2 = vector.load %arg3[%c0_3, %c0_4] : memref<1x384xf32, #tpu.memory_space<vmem>>, vector<1x384xf32>
    %3 = vector.extract_strided_slice %0 {offsets = [0, 0], sizes = [8, 1], strides = [1, 1]} : vector<8x4xf32> to vector<8x1xf32>
    %4 = vector.extract_strided_slice %1 {offsets = [0, 0], sizes = [1, 384], strides = [1, 1]} : vector<4x384xf32> to vector<1x384xf32>
    %5 = vector.broadcast %3 : vector<8x1xf32> to vector<8x384xf32>
    %6 = vector.broadcast %4 : vector<1x384xf32> to vector<8x384xf32>
    %7 = arith.mulf %5, %6 : vector<8x384xf32>
    %8 = vector.broadcast %2 : vector<1x384xf32> to vector<8x384xf32>
    %9 = arith.addf %8, %7 : vector<8x384xf32>
    %10 = vector.extract_strided_slice %0 {offsets = [0, 1], sizes = [8, 1], strides = [1, 1]} : vector<8x4xf32> to vector<8x1xf32>
    %11 = vector.extract_strided_slice %1 {offsets = [1, 0], sizes = [1, 384], strides = [1, 1]} : vector<4x384xf32> to vector<1x384xf32>
    %12 = vector.broadcast %10 : vector<8x1xf32> to vector<8x384xf32>
    %13 = vector.broadcast %11 : vector<1x384xf32> to vector<8x384xf32>
    %14 = arith.mulf %12, %13 : vector<8x384xf32>
    %15 = arith.addf %9, %14 : vector<8x384xf32>
    %16 = vector.extract_strided_slice %0 {offsets = [0, 2], sizes = [8, 1], strides = [1, 1]} : vector<8x4xf32> to vector<8x1xf32>
    %17 = vector.extract_strided_slice %1 {offsets = [2, 0], sizes = [1, 384], strides = [1, 1]} : vector<4x384xf32> to vector<1x384xf32>
    %18 = vector.broadcast %16 : vector<8x1xf32> to vector<8x384xf32>
    %19 = vector.broadcast %17 : vector<1x384xf32> to vector<8x384xf32>
    %20 = arith.mulf %18, %19 : vector<8x384xf32>
    %21 = arith.addf %15, %20 : vector<8x384xf32>
    %22 = vector.extract_strided_slice %0 {offsets = [0, 3], sizes = [8, 1], strides = [1, 1]} : vector<8x4xf32> to vector<8x1xf32>
    %23 = vector.extract_strided_slice %1 {offsets = [3, 0], sizes = [1, 384], strides = [1, 1]} : vector<4x384xf32> to vector<1x384xf32>
    %24 = vector.broadcast %22 : vector<8x1xf32> to vector<8x384xf32>
    %25 = vector.broadcast %23 : vector<1x384xf32> to vector<8x384xf32>
    %26 = arith.mulf %24, %25 : vector<8x384xf32>
    %27 = arith.addf %21, %26 : vector<8x384xf32>
    %28 = vector.extract_strided_slice %27 {offsets = [0, 0], sizes = [8, 128], strides = [1, 1]} : vector<8x384xf32> to vector<8x128xf32>
    %29 = arith.negf %28 : vector<8x128xf32>
    %30 = math.exp %29 : vector<8x128xf32>
    %cst = arith.constant 1.000000e+00 : f32
    %31 = vector.broadcast %cst : f32 to vector<8x128xf32>
    %32 = arith.addf %31, %30 : vector<8x128xf32>
    %33 = arith.divf %31, %32 : vector<8x128xf32>
    %34 = vector.extract_strided_slice %27 {offsets = [0, 128], sizes = [8, 128], strides = [1, 1]} : vector<8x384xf32> to vector<8x128xf32>
    %35 = math.tanh %34 : vector<8x128xf32>
    %36 = vector.extract_strided_slice %27 {offsets = [0, 256], sizes = [8, 128], strides = [1, 1]} : vector<8x384xf32> to vector<8x128xf32>
    %37 = arith.negf %36 : vector<8x128xf32>
    %38 = math.exp %37 : vector<8x128xf32>
    %cst_5 = arith.constant 1.000000e+00 : f32
    %39 = vector.broadcast %cst_5 : f32 to vector<8x128xf32>
    %40 = arith.addf %39, %38 : vector<8x128xf32>
    %41 = arith.divf %39, %40 : vector<8x128xf32>
    %42 = arith.mulf %33, %35 : vector<8x128xf32>
    %43 = math.tanh %42 : vector<8x128xf32>
    %44 = arith.mulf %41, %43 : vector<8x128xf32>
    %45 = arith.truncf %44 : vector<8x128xf32> to vector<8x128xbf16>
    %c0_6 = arith.constant 0 : index
    %c0_7 = arith.constant 0 : index
    %46 = vector.load %arg4[%c0_6, %c0_7] : memref<128x384xbf16, #tpu.memory_space<vmem>>, vector<128x384xbf16>
    %cst_8 = arith.constant dense<0.000000e+00> : vector<8x384xf32>
    %47 = tpu.matmul %45, %46, %cst_8 {dimension_numbers = #tpu.dot_dimension_numbers<[1], [0], [0], [1], [0, 0, 1, 1], [], []>} : vector<8x128xbf16>, vector<128x384xbf16>, vector<8x384xf32> -> vector<8x384xf32>
    %c0_9 = arith.constant 0 : index
    %c0_10 = arith.constant 0 : index
    %48 = vector.load %arg5[%c0_9, %c0_10] : memref<1x384xf32, #tpu.memory_space<vmem>>, vector<1x384xf32>
    %49 = vector.broadcast %48 : vector<1x384xf32> to vector<8x384xf32>
    %50 = arith.addf %47, %49 : vector<8x384xf32>
    %51 = vector.extract_strided_slice %50 {offsets = [0, 0], sizes = [8, 128], strides = [1, 1]} : vector<8x384xf32> to vector<8x128xf32>
    %52 = arith.negf %51 : vector<8x128xf32>
    %53 = math.exp %52 : vector<8x128xf32>
    %cst_11 = arith.constant 1.000000e+00 : f32
    %54 = vector.broadcast %cst_11 : f32 to vector<8x128xf32>
    %55 = arith.addf %54, %53 : vector<8x128xf32>
    %56 = arith.divf %54, %55 : vector<8x128xf32>
    %57 = vector.extract_strided_slice %50 {offsets = [0, 128], sizes = [8, 128], strides = [1, 1]} : vector<8x384xf32> to vector<8x128xf32>
    %58 = math.tanh %57 : vector<8x128xf32>
    %59 = vector.extract_strided_slice %50 {offsets = [0, 256], sizes = [8, 128], strides = [1, 1]} : vector<8x384xf32> to vector<8x128xf32>
    %60 = arith.negf %59 : vector<8x128xf32>
    %61 = math.exp %60 : vector<8x128xf32>
    %cst_12 = arith.constant 1.000000e+00 : f32
    %62 = vector.broadcast %cst_12 : f32 to vector<8x128xf32>
    %63 = arith.addf %62, %61 : vector<8x128xf32>
    %64 = arith.divf %62, %63 : vector<8x128xf32>
    %65 = arith.mulf %56, %58 : vector<8x128xf32>
    %66 = math.tanh %65 : vector<8x128xf32>
    %67 = arith.mulf %64, %66 : vector<8x128xf32>
    %68 = arith.truncf %67 : vector<8x128xf32> to vector<8x128xbf16>
    %c0_13 = arith.constant 0 : index
    %c0_14 = arith.constant 0 : index
    %69 = vector.load %arg6[%c0_13, %c0_14] : memref<128x4xbf16, #tpu.memory_space<vmem>>, vector<128x4xbf16>
    %cst_15 = arith.constant dense<0.000000e+00> : vector<8x4xf32>
    %70 = tpu.matmul %68, %69, %cst_15 {dimension_numbers = #tpu.dot_dimension_numbers<[1], [0], [0], [1], [0, 0, 1, 1], [], []>} : vector<8x128xbf16>, vector<128x4xbf16>, vector<8x4xf32> -> vector<8x4xf32>
    %c0_16 = arith.constant 0 : index
    %c0_17 = arith.constant 0 : index
    %71 = vector.load %arg7[%c0_16, %c0_17] : memref<1x4xf32, #tpu.memory_space<vmem>>, vector<1x4xf32>
    %72 = vector.broadcast %71 : vector<1x4xf32> to vector<8x4xf32>
    %73 = arith.addf %70, %72 : vector<8x4xf32>
    %c0_18 = arith.constant 0 : index
    %c0_19 = arith.constant 0 : index
    %74 = vector.load %arg8[%c0_18, %c0_19] : memref<8x4xf32, #tpu.memory_space<vmem>>, vector<8x4xf32>
    tpu.vector_store %arg8[%c0_18, %c0_19], %73 {strides = array<i32>} : memref<8x4xf32, #tpu.memory_space<vmem>>, vector<8x4xf32>,
    return
  }
  func.func @transform_0(%arg0: i32) -> (i32, i32) {
    %c0_i32 = arith.constant 0 : i32
    %c0_i32_0 = arith.constant 0 : i32
    return %arg0, %c0_i32 : i32, i32
  }
  func.func @transform_1(%arg0: i32) -> (i32, i32) {
    %c0_i32 = arith.constant 0 : i32
    %c0_i32_0 = arith.constant 0 : i32
    %c0_i32_1 = arith.constant 0 : i32
    return %c0_i32, %c0_i32_0 : i32, i32
  }
  func.func @transform_2(%arg0: i32) -> (i32, i32) {
    %c0_i32 = arith.constant 0 : i32
    %c0_i32_0 = arith.constant 0 : i32
    %c0_i32_1 = arith.constant 0 : i32
    return %c0_i32, %c0_i32_0 : i32, i32
  }
  func.func @transform_3(%arg0: i32) -> (i32, i32) {
    %c0_i32 = arith.constant 0 : i32
    %c0_i32_0 = arith.constant 0 : i32
    %c0_i32_1 = arith.constant 0 : i32
    return %c0_i32, %c0_i32_0 : i32, i32
  }
  func.func @transform_4(%arg0: i32) -> (i32, i32) {
    %c0_i32 = arith.constant 0 : i32
    %c0_i32_0 = arith.constant 0 : i32
    %c0_i32_1 = arith.constant 0 : i32
    return %c0_i32, %c0_i32_0 : i32, i32
  }
  func.func @transform_5(%arg0: i32) -> (i32, i32) {
    %c0_i32 = arith.constant 0 : i32
    %c0_i32_0 = arith.constant 0 : i32
    %c0_i32_1 = arith.constant 0 : i32
    return %c0_i32, %c0_i32_0 : i32, i32
  }
  func.func @transform_6(%arg0: i32) -> (i32, i32) {
    %c0_i32 = arith.constant 0 : i32
    %c0_i32_0 = arith.constant 0 : i32
    %c0_i32_1 = arith.constant 0 : i32
    return %c0_i32, %c0_i32_0 : i32, i32
  }
  func.func @transform_7(%arg0: i32) -> (i32, i32) {
    %c0_i32 = arith.constant 0 : i32
    %c0_i32_0 = arith.constant 0 : i32
    return %arg0, %c0_i32 : i32, i32
  }
}

</mosaic_0001>

<bundles_post_ra>
// kernel: tpu_custom_call.1
= control target key start
LH: loop header
LB: loop body
LE: loop exit
PB: predicated region body
PF: predicated region fallthrough
CT: control target
= control target key end

     0   :  { %12 = vsyncpa [#allocation3], 0  ;;  %s1283_s0 = inlined_call_operand.hbm [shape: f32[8,4], index: 0, kind: input, shape index: {}]   ;;  %s1284_s1 = inlined_call_operand.hbm [shape: f32[4,384], index: 1, kind: input, shape index: {}]   ;;  %s1285_s2 = inlined_call_operand.hbm [shape: f32[1,384], index: 2, kind: input, shape index: {}]   ;;  %s1286_s3 = inlined_call_operand.hbm [shape: bf16[128,384], index: 3, kind: input, shape index: {}]   ;;  %s1287_s4 = inlined_call_operand.hbm [shape: f32[1,384], index: 4, kind: input, shape index: {}]   ;;  %s1288_s5 = inlined_call_operand.hbm [shape: bf16[128,4], index: 5, kind: input, shape index: {}]   ;;  %s1289_s6 = inlined_call_operand.hbm [shape: f32[1,4], index: 6, kind: input, shape index: {}]   ;;  %s1290_s7 = inlined_call_operand.hbm [shape: f32[8,4], index: 7, kind: output, shape index: {}]  }
   0x1   :  { %13 = vsyncpa [#allocation6], 0 }
   0x2   :  { %14 = vsyncpa [#allocation9], 0 }
   0x3   :  { %15 = vsyncpa [#allocation12], 0 }
   0x4   :  { %16 = vsyncpa [#allocation4], 0  ;;  %s1075_s24 = smov [#allocation5]   ;;  %s1076_s26 = smov [#allocation8]  }
   0x5   :  { %s33_s25 = sshll.u32 %s1075_s24, 4  ;;  %s52_s27 = sshll.u32 %s1076_s26, 4  ;;  %s34_s25 = int_to_ptr.vmem [resolvable:$true] %s33_s25  ;;  %s1133_s27 = int_to_ptr.vmem [resolvable:$true] %s52_s27 }
   0x6   :  { %s889_s30 = scalar_lea.hbm %s1284_s1, 192 }
   0x7   :  { %p890_p0 = scmp.ne.s32.totalorder %s1284_s1, %s889_s30  ;;  %p893_p1 = scmp.lt.u32.totalorder %s889_s30, %s1284_s1 }
   0x9   :  { %p895_p2 = pnand %p893_p1, %p890_p0 }
   0xb   :  { %898 = shalt.err (!%p895_p2)
}
   0xc   :  { %s899_s12 = scalar_lea.vmem %s34_s25, 192  ;;  %p904_p4 = scmp.lt.s32.totalorder %s34_s25, %s34_s25 }
   0xd   :  { %p900_p3 = scmp.ne.s32.totalorder %s34_s25, %s899_s12  ;;  %p905_p5 = scmp.lt.s32.totalorder %s899_s12, %s899_s12 }
   0xf   :  { %p906_p6 = por %p905_p5, %p904_p4 }
  0x11   :  { %p907_p7 = pnand %p906_p6, %p900_p3 }
  0x13   :  { %910 = shalt.err (!%p907_p7)
}
  0x14   :  { %36 = dma.hbm_to_vmem [thread:$0]  %s1284_s1, 192, %s34_s25, [#allocation6]  }
  0x15   :  { %s911_s17 = scalar_lea.hbm %s1286_s3, 3072 }
  0x16   :  { %p912_p8 = scmp.ne.s32.totalorder %s1286_s3, %s911_s17  ;;  %p915_p9 = scmp.lt.u32.totalorder %s911_s17, %s1286_s3 }
  0x18   :  { %p917_p10 = pnand %p915_p9, %p912_p8 }
  0x1a   :  { %920 = shalt.err (!%p917_p10)
}
  0x1b   :  { %s921_s22 = scalar_lea.vmem %s1133_s27, 3072  ;;  %p926_p12 = scmp.lt.s32.totalorder %s1133_s27, %s1133_s27 }
  0x1c   :  { %p922_p11 = scmp.ne.s32.totalorder %s1133_s27, %s921_s22  ;;  %p927_p13 = scmp.lt.s32.totalorder %s921_s22, %s921_s22 }
  0x1e   :  { %p928_p0 = por %p927_p13, %p926_p12 }
  0x20   :  { %p929_p1 = pnand %p928_p0, %p922_p11 }
  0x22   :  { %932 = shalt.err (!%p929_p1)
}
  0x23   :  { %s1077_s1 = smov 192   ;;  %s1078_s23 = smov 12  }
  0x24   :  { %58 = dma.hbm_to_vmem [thread:$0]  %s1286_s3, 3072, %s1133_s27, [#allocation9], %s1077_s1, %s1077_s1, %s1078_s23  }
  0x25   :  { %s1079_s26 = smov [#allocation11]   ;;  %s933_s8 = scalar_lea.hbm %s1288_s5, 1024 }
  0x26   :  { %s74_s28 = sshll.u32 %s1079_s26, 4  ;;  %p934_p2 = scmp.ne.s32.totalorder %s1288_s5, %s933_s8  ;;  %s75_s28 = int_to_ptr.vmem [resolvable:$true] %s74_s28 }
  0x27   :  { %p937_p3 = scmp.lt.u32.totalorder %s933_s8, %s1288_s5 }
  0x29   :  { %p939_p4 = pnand %p937_p3, %p934_p2 }
  0x2b   :  { %942 = shalt.err (!%p939_p4)
}
  0x2c   :  { %s943_s13 = scalar_lea.vmem %s75_s28, 1024  ;;  %p948_p6 = scmp.lt.s32.totalorder %s75_s28, %s75_s28 }
  0x2d   :  { %p944_p5 = scmp.ne.s32.totalorder %s75_s28, %s943_s13  ;;  %p949_p7 = scmp.lt.s32.totalorder %s943_s13, %s943_s13 }
  0x2f   :  { %p950_p8 = por %p949_p7, %p948_p6 }
  0x31   :  { %p951_p9 = pnand %p950_p8, %p944_p5 }
  0x33   :  { %954 = shalt.err (!%p951_p9)
}
  0x34   :  { %s1080_s3 = smov 64   ;;  %s1081_s27 = smov 4  }
  0x35   :  { %80 = dma.hbm_to_vmem [thread:$0]  %s1288_s5, 1024, %s75_s28, [#allocation12], %s1080_s3, %s1080_s3, %s1081_s27  }
  0x36   :  { %s1082_s16 = smov [#allocation2]   ;;  %s1083_s18 = smov [#allocation7]  }
  0x37   :  { %s23_s17 = sshll.u32 %s1082_s16, 4  ;;  %s43_s19 = sshll.u32 %s1083_s18, 4  ;;  %s24_s17 = int_to_ptr.vmem [resolvable:$true] %s23_s17  ;;  %s44_s19 = int_to_ptr.vmem [resolvable:$true] %s43_s19 }
  0x38   :  { %s955_s22 = scalar_lea.hbm %s1283_s0, 128 }
  0x39   :  { %p956_p10 = scmp.ne.s32.totalorder %s1283_s0, %s955_s22  ;;  %p959_p11 = scmp.lt.u32.totalorder %s955_s22, %s1283_s0 }
  0x3b   :  { %p961_p12 = pnand %p959_p11, %p956_p10 }
  0x3d   :  { %964 = shalt.err (!%p961_p12)
}
  0x3e   :  { %s965_s5 = scalar_lea.vmem %s24_s17, 128  ;;  %p970_p0 = scmp.lt.s32.totalorder %s24_s17, %s24_s17 }
  0x3f   :  { %p966_p13 = scmp.ne.s32.totalorder %s24_s17, %s965_s5  ;;  %p971_p1 = scmp.lt.s32.totalorder %s965_s5, %s965_s5 }
  0x41   :  { %p972_p2 = por %p971_p1, %p970_p0 }
  0x43   :  { %p973_p3 = pnand %p972_p2, %p966_p13 }
  0x45   :  { %976 = shalt.err (!%p973_p3)
}
  0x46   :  { %26 = dma.hbm_to_vmem [thread:$0]  %s1283_s0, 128, %s24_s17, [#allocation3]  }
  0x47   :  { %s977_s8 = scalar_lea.hbm %s1285_s2, 48 }
  0x48   :  { %p978_p4 = scmp.ne.s32.totalorder %s1285_s2, %s977_s8  ;;  %p981_p5 = scmp.lt.u32.totalorder %s977_s8, %s1285_s2 }
  0x4a   :  { %p983_p6 = pnand %p981_p5, %p978_p4 }
  0x4c   :  { %986 = shalt.err (!%p983_p6)
}
  0x4d   :  { %s987_s13 = scalar_lea.vmem %s44_s19, 48  ;;  %s991_s3 = scalar_lea.vmem %s44_s19, 64 }
  0x4e   :  { %p988_p7 = scmp.ne.s32.totalorder %s44_s19, %s987_s13  ;;  %p992_p8 = scmp.lt.s32.totalorder %s44_s19, %s44_s19 }
  0x4f   :  { %p993_p9 = scmp.lt.s32.totalorder %s991_s3, %s987_s13 }
  0x51   :  { %p994_p10 = por %p993_p9, %p992_p8 }
  0x53   :  { %p995_p11 = pnand %p994_p10, %p988_p7 }
  0x55   :  { %998 = shalt.err (!%p995_p11)
}
  0x56   :  { %46 = dma.hbm_to_vmem [thread:$0]  %s1285_s2, 48, %s44_s19, [#allocation6]  }
  0x57   :  { %s1084_s14 = smov [#allocation10]   ;;  %s1085_s16 = smov [#allocation13]  }
  0x58   :  { %s65_s15 = sshll.u32 %s1084_s14, 4  ;;  %s87_s17 = sshll.u32 %s1085_s16, 4  ;;  %s66_s15 = int_to_ptr.vmem [resolvable:$true] %s65_s15  ;;  %s88_s17 = int_to_ptr.vmem [resolvable:$true] %s87_s17 }
  0x59   :  { %s999_s21 = scalar_lea.hbm %s1287_s4, 48 }
  0x5a   :  { %p1000_p12 = scmp.ne.s32.totalorder %s1287_s4, %s999_s21  ;;  %p1003_p13 = scmp.lt.u32.totalorder %s999_s21, %s1287_s4 }
  0x5c   :  { %p1005_p0 = pnand %p1003_p13, %p1000_p12 }
  0x5e   :  { %1008 = shalt.err (!%p1005_p0)
}
  0x5f   :  { %s1009_s2 = scalar_lea.vmem %s66_s15, 48  ;;  %s1013_s19 = scalar_lea.vmem %s66_s15, 64 }
  0x60   :  { %p1010_p1 = scmp.ne.s32.totalorder %s66_s15, %s1009_s2  ;;  %p1014_p2 = scmp.lt.s32.totalorder %s66_s15, %s66_s15 }
  0x61   :  { %p1015_p3 = scmp.lt.s32.totalorder %s1013_s19, %s1009_s2 }
  0x63   :  { %p1016_p4 = por %p1015_p3, %p1014_p2 }
  0x65   :  { %p1017_p5 = pnand %p1016_p4, %p1010_p1 }
  0x67   :  { %1020 = shalt.err (!%p1017_p5)
}
  0x68   :  { %68 = dma.hbm_to_vmem [thread:$0]  %s1287_s4, 48, %s66_s15, [#allocation9]  }
  0x69   :  { %s1021_s29 = scalar_lea.hbm %s1289_s6, 16 }
  0x6a   :  { %p1022_p6 = scmp.ne.s32.totalorder %s1289_s6, %s1021_s29  ;;  %p1025_p7 = scmp.lt.u32.totalorder %s1021_s29, %s1289_s6 }
  0x6c   :  { %p1027_p8 = pnand %p1025_p7, %p1022_p6 }
  0x6e   :  { %1030 = shalt.err (!%p1027_p8)
}
  0x6f   :  { %s1031_s11 = scalar_lea.vmem %s88_s17, 16  ;;  %s1035_s12 = scalar_lea.vmem %s88_s17, 32 }
  0x70   :  { %p1032_p9 = scmp.ne.s32.totalorder %s88_s17, %s1031_s11  ;;  %p1036_p10 = scmp.lt.s32.totalorder %s88_s17, %s88_s17 }
  0x71   :  { %p1037_p11 = scmp.lt.s32.totalorder %s1035_s12, %s1031_s11 }
  0x73   :  { %p1038_p12 = por %p1037_p11, %p1036_p10 }
  0x75   :  { %p1039_p13 = pnand %p1038_p12, %p1032_p9 }
  0x77   :  { %1042 = shalt.err (!%p1039_p13)
}
  0x78   :  { %90 = dma.hbm_to_vmem [thread:$0]  %s1289_s6, 16, %s88_s17, [#allocation12]  }
  0x79   :  { %1065 = dma.done.wait [#allocation3], 128  }
  0x7a   :  { %1066 = vsyncadd [#allocation3], 4294967168 }
  0x7b   :  { %1067 = dma.done.wait [#allocation6], 240  }
  0x7c   :  { %1068 = vsyncadd [#allocation6], 4294967056 }
  0x7d   :  { %1069 = dma.done.wait [#allocation9], 3120  }
  0x7e   :  { %1070 = vsyncadd [#allocation9], 4294964176 }
  0x7f   :  { %1071 = dma.done.wait [#allocation12], 1040  }
  0x80   :  { %1072 = vsyncadd [#allocation12], 4294966256  ;;  %v1086_v0 = vmov 0   ;;  %v1087_v1 = vmov 2   ;;  %v113_v2 = vld [vmem:[#allocation2] sm:$0xff]  ;;  %v1088_v3 = vmov 1   ;;  %v124_v30 = vlaneseq }
  0x81   :  { %820 = vset.pattern.permute.xlu0 %v1086_v0  ;;  %822 = vset.pattern.permute.xlu1 %v1087_v1  ;;  %v1089_v4 = vmov 3   ;;  %v825_v5 = vld [vmem:[#allocation8 + $0x4] ss:$12 sps:$4 sm:$0xff]   ;;  %v827_v6 = vld [vmem:[#allocation8] ss:$12 sps:$4 sm:$0xff]   ;;  %v1090_v8 = vmov 0.0  }
  0x82   :  { %510 = vmatprep.mubr.bf16.mxu0 %v1086_v0  ;;  %119 = vperm.xlu0 %820, %v113_v2   ;;  %v828_v7 = vld [vmem:[#allocation8 + $0x8] ss:$12 sps:$4 sm:$0xff]   ;;  %v831_v10 = vld [vmem:[#allocation8 + $0x18] ss:$12 sps:$4 sm:$0xff]   ;;  %v832_v11 = vld [vmem:[#allocation8 + $0x20] ss:$12 sps:$4 sm:$0xff]  }
  0x83   :  { %211 = vperm.xlu1 %822, %v113_v2   ;;  %478 = vmatprep.subr.bf16.mxu0 %v825_v5  ;;  %v829_v9 = vld [vmem:[#allocation8 + $0x1c] ss:$12 sps:$4 sm:$0xff]   ;;  %v833_v12 = vld [vmem:[#allocation8 + $0x34] ss:$12 sps:$4 sm:$0xff]   ;;  %v836_v14 = vld [vmem:[#allocation8 + $0x38] ss:$12 sps:$4 sm:$0xff]  }
  0x84   :  { %762 = vmatprep.subr.bf16.mxu1 %v1090_v8  ;;  %479 = vmatpush1.bf16.msra.mxu0 %v827_v6  ;;  %v835_v13 = vld [vmem:[#allocation8 + $0x30] ss:$12 sps:$4 sm:$0xff]   ;;  %v837_v15 = vld [vmem:[#allocation8 + $0x4c] ss:$12 sps:$4 sm:$0xff]   ;;  %v839_v16 = vld [vmem:[#allocation8 + $0x48] ss:$12 sps:$4 sm:$0xff]  }
  0x85   :  { %763 = vmatpush3.bf16.msra.mxu1 %v828_v7  ;;  %480 = vmatprep.subr.bf16.mxu0 %v829_v9  ;;  %v840_v17 = vld [vmem:[#allocation8 + $0x50] ss:$12 sps:$4 sm:$0xff]   ;;  %v843_v19 = vld [vmem:[#allocation8 + $0x60] ss:$12 sps:$4 sm:$0xff]   ;;  %v844_v20 = vld [vmem:[#allocation8 + $0x68] ss:$12 sps:$4 sm:$0xff]  }
  0x86   :  { %821 = vset.pattern.permute.xlu0 %v1088_v3  ;;  %764 = vmatprep.subr.bf16.mxu1 %v1090_v8  ;;  %v841_v18 = vld [vmem:[#allocation8 + $0x64] ss:$12 sps:$4 sm:$0xff]   ;;  %v845_v21 = vld [vmem:[#allocation8 + $0x7c] ss:$12 sps:$4 sm:$0xff]   ;;  %v848_v23 = vld [vmem:[#allocation8 + $0x80] ss:$12 sps:$4 sm:$0xff]  }
  0x87   :  { %823 = vset.pattern.permute.xlu1 %v1089_v4  ;;  %174 = vperm.xlu0 %821, %v113_v2   ;;  %v847_v22 = vld [vmem:[#allocation8 + $0x78] ss:$12 sps:$4 sm:$0xff]   ;;  %v849_v24 = vld [vmem:[#allocation8 + $0x94] ss:$12 sps:$4 sm:$0xff]   ;;  %vm1091_vm0 = vmmov 0   ;;  %v125_v31 = vshrl.u32 %v124_v30, 7 }
  0x88   :  { %248 = vperm.xlu1 %823, %v113_v2   ;;  %481 = vmatpush1.bf16.msra.mxu0 %v831_v10  ;;  %v851_v25 = vld [vmem:[#allocation8 + $0x90] ss:$12 sps:$4 sm:$0xff]   ;;  %v852_v26 = vld [vmem:[#allocation8 + $0x98] ss:$12 sps:$4 sm:$0xff]   ;;  %v855_v28 = vld [vmem:[#allocation8 + $0xa8] ss:$12 sps:$4 sm:$0xff]  }
  0x89   :  { %765 = vmatpush3.bf16.msra.mxu1 %v832_v11  ;;  %482 = vmatprep.subr.bf16.mxu0 %v833_v12  ;;  %v853_v27 = vld [vmem:[#allocation8 + $0xac] ss:$12 sps:$4 sm:$0xff]   ;;  %v856_v29 = vld [vmem:[#allocation8 + $0xb0] ss:$12 sps:$4 sm:$0xff]   ;;  %v1235_v32 = vsub.s32 0, %v125_v31  ;;  %v1239_v37 = vsub.s32 1, %v125_v31 }
  0x8a   :  { %766 = vmatprep.subr.bf16.mxu1 %v1090_v8  ;;  %778 = vmatprep.mubr.msk.bf16.mxu1 %vm1091_vm0, %v1090_v8  ;;  %v114_v33 = vld [vmem:[#allocation5] sm:$0xff]  ;;  %v115_v34 = vld [vmem:[#allocation5 + $0x8] sm:$0xf]  ;;  %v1241_v38 = vsub.s32 2, %v125_v31  ;;  %v253_v39 = vsub.s32 3, %v125_v31  ;;  %v130_v40 = vsub.s32 4, %v125_v31 }
  0x8b   :  { %824 = vset.pattern.permute.xlu0 %v1089_v4  ;;  %v127_v35 = vrot.slane %v114_v33, %v1235_v32  ;;  %v135_v36 = vrot.slane %v115_v34, %v1235_v32  ;;  %v116_v41 = vld [vmem:[#allocation7] sm:$0x7]  ;;  %v180_v44 = vrot.slane %v114_v33, %v1239_v37  ;;  %v188_v45 = vrot.slane %v115_v34, %v1239_v37  ;;  %s1092_s6 = smov [#allocation14]  }
  0x8c   :  { %483 = vmatpush1.bf16.msra.mxu0 %v835_v13  ;;  %v183_v46 = vsub.s32 5, %v125_v31  ;;  %v217_v48 = vrot.slane %v114_v33, %v1241_v38  ;;  %v254_v50 = vrot.slane %v114_v33, %v253_v39  ;;  %v131_v51 = vrot.slane %v114_v33, %v130_v40  ;;  %s695_s3 = sshll.u32 %s1092_s6, 4  ;;  %s696_s3 = int_to_ptr.vmem [resolvable:$true] %s695_s3 }
  0x8d   :  { %767 = vmatpush3.bf16.msra.mxu1 %v836_v14  ;;  %484 = vmatprep.subr.bf16.mxu0 %v837_v15  ;;  %v142_v42 = vrot.slane %v127_v35, %v1235_v32  ;;  %v150_v43 = vrot.slane %v135_v36, %v1235_v32  ;;  %v158_v52 = vrot.slane %v116_v41, %v1235_v32  ;;  %v220_v0 = vsub.s32 6, %v125_v31  ;;  %s1043_s0 = scalar_lea.vmem %s696_s3, 128  ;;  %p1048_p1 = scmp.lt.s32.totalorder %s696_s3, %s696_s3 }
  0x8e   :  { %768 = vmatprep.subr.bf16.mxu1 %v1090_v8  ;;  %v166_v53 = vrot.slane %v116_v41, %v1241_v38  ;;  %v225_v54 = vrot.slane %v115_v34, %v1241_v38  ;;  %v195_v57 = vrot.slane %v180_v44, %v1239_v37  ;;  %v203_v58 = vrot.slane %v188_v45, %v1239_v37  ;;  %p1044_p0 = scmp.ne.s32.totalorder %s696_s3, %s1043_s0  ;;  %p1049_p2 = scmp.lt.s32.totalorder %s1043_s0, %s1043_s0 }
  0x8f   :  { %v184_v59 = vrot.slane %v114_v33, %v183_v46  ;;  %v262_v60 = vrot.slane %v115_v34, %v253_v39  ;;  %v232_v61 = vrot.slane %v217_v48, %v1241_v38  ;;  %v269_v62 = vrot.slane %v254_v50, %v253_v39 }
  0x90   :  { %485 = vmatpush1.bf16.msra.mxu0 %v839_v16  ;;  %v146_v63 = vrot.slane %v131_v51, %v1235_v32  ;;  %v240_v1 = vrot.slane %v225_v54, %v1241_v38  ;;  %v257_v10 = vsub.s32 7, %v125_v31  ;;  %v162_v16 = vrot.slane %v116_v41, %v1239_v37  ;;  %v857_v51 = vld [vmem:[#allocation11] sm:$0xff]   ;;  %v860_v54 = vld [vmem:[#allocation11 + $0x18] sm:$0xff]   ;;  %p1050_p3 = por %p1049_p2, %p1048_p1 }
  0x91   :  { %769 = vmatpush3.bf16.msra.mxu1 %v840_v17  ;;  %486 = vmatprep.subr.bf16.mxu0 %v841_v18  ;;  %v199_v9 = vrot.slane %v184_v59, %v1239_v37  ;;  %v277_v11 = vrot.slane %v262_v60, %v253_v39  ;;  %v221_v18 = vrot.slane %v114_v33, %v220_v0  ;;  %v333_v59 = vld [vmem:[#allocation10] sm:$0x7]  ;;  %vm687_vm1 = vcmask 31744  }
  0x92   :  { %770 = vmatprep.subr.bf16.mxu1 %v1090_v8  ;;  %v338_v60 = vrot.slane %v333_v59, %v1235_v32  ;;  %v346_v0 = vrot.slane %v333_v59, %v1241_v38  ;;  %p1051_p4 = pnand %p1050_p3, %p1044_p0 }
  0x94   :  { %487 = vmatpush1.bf16.msra.mxu0 %v843_v19 }
  0x95   :  { %771 = vmatpush3.bf16.msra.mxu1 %v844_v20  ;;  %488 = vmatprep.subr.bf16.mxu0 %v845_v21  ;;  %v258_v21 = vrot.slane %v114_v33, %v257_v10 }
  0x96   :  { %772 = vmatprep.subr.bf16.mxu1 %v1090_v8 }
  0x97   :  { %v273_v30 = vrot.slane %v258_v21, %v253_v39  ;;  %v735_v21 = vld [vmem:[#allocation13] ss:$0 sm:$0xff] }
  0x98   :  { %489 = vmatpush1.bf16.msra.mxu0 %v847_v22 }
  0x99   :  { %773 = vmatpush3.bf16.msra.mxu1 %v848_v23  ;;  %490 = vmatprep.subr.bf16.mxu0 %v849_v24 }
  0x9a   :  { %774 = vmatprep.subr.bf16.mxu1 %v1090_v8 }
  0x9c   :  { %491 = vmatpush1.bf16.msra.mxu0 %v851_v25 }
  0x9d   :  { %775 = vmatpush3.bf16.msra.mxu1 %v852_v26  ;;  %492 = vmatprep.subr.bf16.mxu0 %v853_v27  ;;  %v236_v27 = vrot.slane %v221_v18, %v1241_v38 }
  0x9e   :  { %776 = vmatprep.subr.bf16.mxu1 %v1090_v8 }
  0xa0   :  { %493 = vmatpush1.bf16.msra.mxu0 %v855_v28 }
  0xa1   :  { %777 = vmatpush3.bf16.msra.mxu1 %v856_v29  ;;  %782 = vmatprep.subr.bf16.mxu0 %v1090_v8 }
 0x101   :  { %v120_v47 = vpop.permute.xlu0 %119 }
 0x102   :  { %v212_v49 = vpop.permute.xlu1 %211  ;;  %v151_v55 = vmul.f32 %v142_v42, %v120_v47  ;;  %v153_v56 = vmul.f32 %v150_v43, %v120_v47  ;;  %v152_v17 = vmul.f32 %v146_v63, %v120_v47 }
 0x103   :  { %v241_v12 = vmul.f32 %v232_v61, %v212_v49  ;;  %v243_v19 = vmul.f32 %v240_v1, %v212_v49  ;;  %v242_v34 = vmul.f32 %v236_v27, %v212_v49 }
 0x104   :  { %v170_v4 = vadd.f32 %v158_v52, %v151_v55  ;;  %v172_v5 = vadd.f32 %v166_v53, %v153_v56  ;;  %v171_v26 = vadd.f32 %v162_v16, %v152_v17  ;;  %v858_v52 = vld [vmem:[#allocation11 + $0x8] sm:$0xff]   ;;  %v859_v53 = vld [vmem:[#allocation11 + $0x10] sm:$0xff]   ;;  %v861_v55 = vld [vmem:[#allocation11 + $0x20] sm:$0xff]  }
 0x105   :  { %v862_v56 = vld [vmem:[#allocation11 + $0x28] sm:$0xff]  }
 0x106   :  { %v175_v2 = vpop.permute.xlu0 %174 }
 0x107   :  { %v249_v3 = vpop.permute.xlu1 %248  ;;  %v204_v6 = vmul.f32 %v195_v57, %v175_v2  ;;  %v206_v7 = vmul.f32 %v203_v58, %v175_v2  ;;  %v205_v22 = vmul.f32 %v199_v9, %v175_v2  ;;  %v863_v57 = vld [vmem:[#allocation11 + $0x30] sm:$0xff]   ;;  %v864_v58 = vld [vmem:[#allocation11 + $0x38] sm:$0xff]  }
 0x108   :  { %v278_v15 = vmul.f32 %v269_v62, %v249_v3  ;;  %v280_v24 = vmul.f32 %v277_v11, %v249_v3  ;;  %v279_v36 = vmul.f32 %v273_v30, %v249_v3 }
 0x109   :  { %v207_v13 = vadd.f32 %v204_v6, %v170_v4  ;;  %v209_v14 = vadd.f32 %v206_v7, %v172_v5  ;;  %v208_v29 = vadd.f32 %v205_v22, %v171_v26 }
 0x10b   :  { %v244_v20 = vadd.f32 %v241_v12, %v207_v13  ;;  %v246_v23 = vadd.f32 %v243_v19, %v209_v14  ;;  %v245_v35 = vadd.f32 %v242_v34, %v208_v29 }
 0x10d   :  { %v281_v25 = vadd.f32 %v278_v15, %v244_v20  ;;  %v283_v31 = vadd.f32 %v280_v24, %v246_v23  ;;  %v282_v41 = vadd.f32 %v279_v36, %v245_v35 }
 0x10f   :  { %v707_v28 = vmul.f32 -1.442695, %v281_v25  ;;  %v708_v40 = vmul.f32 -1.442695, %v283_v31 }
 0x111   :  { %865 = vpow2.f32 %v707_v28 }
 0x112   :  { %867 = vpow2.f32 %v708_v40 }
 0x113   :  { %869 = vtanh.f32 %v282_v41 }
 0x11b   :  { %v866_v42 = vpop.eup %865 }
 0x11c   :  { %v287_v33 = vadd.f32 1.0, %v866_v42  ;;  %v868_v43 = vpop.eup %867 }
 0x11d   :  { %v294_v44 = vadd.f32 1.0, %v868_v43  ;;  %v870_v45 = vpop.eup %869 }
 0x11e   :  { %871 = vrcp.f32 %v287_v33 }
 0x11f   :  { %873 = vrcp.f32 %v294_v44 }
 0x128   :  { %v872_v46 = vpop.eup %871 }
 0x129   :  { %v297_v47 = vmul.f32 %v872_v46, %v870_v45  ;;  %v874_v39 = vpop.eup %873 }
 0x12b   :  { %875 = vtanh.f32 %v297_v47 }
 0x135   :  { %v876_v48 = vpop.eup %875 }
 0x136   :  { %v299_v50 = vmul.f32 %v876_v48, %v874_v39 }
 0x138   :  { %v300_v49 = vpack.c.bf16 %v299_v50, %v299_v50 }
 0x13a   :  { %511 = vmatmul.mubr.bf16.vlgmr.msra.gmra.mrb[0].mxu0 %v300_v49  ;;  %779 = vmatmul.mubr.bf16.vlgmr.msra.gmra.mrb[0].mxu1 %v300_v49 }
 0x13b   :  { %798 = vmatprep.mubr.msk.bf16.mxu0 %vm1091_vm0, %v1090_v8  ;;  %783 = vmatpush3.bf16.msra.mxu0 %v857_v51 }
 0x13c   :  { %784 = vmatprep.subr.bf16.mxu0 %v1090_v8 }
 0x13f   :  { %785 = vmatpush3.bf16.msra.mxu0 %v858_v52 }
 0x140   :  { %786 = vmatprep.subr.bf16.mxu0 %v1090_v8 }
 0x143   :  { %787 = vmatpush3.bf16.msra.mxu0 %v859_v53 }
 0x144   :  { %788 = vmatprep.subr.bf16.mxu0 %v1090_v8 }
 0x147   :  { %789 = vmatpush3.bf16.msra.mxu0 %v860_v54 }
 0x148   :  { %790 = vmatprep.subr.bf16.mxu0 %v1090_v8 }
 0x14b   :  { %791 = vmatpush3.bf16.msra.mxu0 %v861_v55 }
 0x14c   :  { %792 = vmatprep.subr.bf16.mxu0 %v1090_v8 }
 0x14f   :  { %793 = vmatpush3.bf16.msra.mxu0 %v862_v56 }
 0x150   :  { %794 = vmatprep.subr.bf16.mxu0 %v1090_v8 }
 0x153   :  { %795 = vmatpush3.bf16.msra.mxu0 %v863_v57 }
 0x154   :  { %796 = vmatprep.subr.bf16.mxu0 %v1090_v8  ;;  %v342_v8 = vrot.slane %v333_v59, %v1239_v37 }
 0x157   :  { %797 = vmatpush3.bf16.msra.mxu0 %v864_v58 }
 0x20d   :  { %v512_v61 = vpop.f32.mrb[0].mxu0  ;;  %v553_v62 = vpop.f32.mrb[0].mxu1 }
 0x20e   :  { %v513_v63 = vadd.f32 %v512_v61, %v338_v60  ;;  %v514_v1 = vpop.f32.mrb[1].mxu0  ;;  %v780_v2 = vpop.f32.mrb[1].mxu1  ;;  %v554_v9 = vadd.f32 %v553_v62, %v346_v0 }
 0x20f   :  { %v516_v3 = vpop.f32.mrb[2].mxu0  ;;  %v556_v4 = vpop.f32.mrb[2].mxu1  ;;  %v515_v11 = vadd.f32 %v514_v1, %v342_v8 }
 0x210   :  { %v733_v5 = vmul.f32 -1.442695, %v513_v63  ;;  %v517_v6 = vpop.f32.mrb[3].mxu0  ;;  %v781_v7 = vpop.f32.mrb[3].mxu1  ;;  %v734_v10 = vmul.f32 -1.442695, %v554_v9 }
 0x212   :  { %877 = vpow2.f32 %v733_v5 }
 0x213   :  { %879 = vpow2.f32 %v734_v10 }
 0x214   :  { %881 = vtanh.f32 %v515_v11 }
 0x21c   :  { %v878_v32 = vpop.eup %877 }
 0x21d   :  { %v562_v12 = vadd.f32 1.0, %v878_v32  ;;  %v880_v13 = vpop.eup %879 }
 0x21e   :  { %v569_v38 = vadd.f32 1.0, %v880_v13  ;;  %v882_v14 = vpop.eup %881 }
 0x21f   :  { %883 = vrcp.f32 %v562_v12 }
 0x220   :  { %885 = vrcp.f32 %v569_v38 }
 0x229   :  { %v884_v15 = vpop.eup %883 }
 0x22a   :  { %v572_v16 = vmul.f32 %v884_v15, %v882_v14  ;;  %v886_v17 = vpop.eup %885 }
 0x22c   :  { %887 = vtanh.f32 %v572_v16 }
 0x236   :  { %v888_v18 = vpop.eup %887 }
 0x237   :  { %v574_v19 = vmul.f32 %v888_v18, %v886_v17 }
 0x239   :  { %v575_v20 = vpack.c.bf16 %v574_v19, %v574_v19 }
 0x23b   :  { %799 = vmatmul.mubr.bf16.vlgmr.msra.gmra.mrb[4].mxu0 %v575_v20 }
 0x30e   :  { %v681_v37 = vpop.f32.mrb[4].mxu0 }
 0x30f   :  { %v682_v22 = vadd.f32 %v735_v21, %v681_v37  ;;  %v800_v23 = vpop.f32.mrb[5].mxu0 }
 0x310   :  { %v684_v24 = vpop.f32.mrb[6].mxu0 }
 0x311   :  { %v801_v25 = vpop.f32.mrb[7].mxu0  ;;  %688 = vst.msk [vmem:[#allocation14] sm:$0xff] %vm687_vm1, %v682_v22 }
 0x312   :  { %1054 = shalt.err (!%p1051_p4)
}
 0x313   :  { %s1055_s15 = scalar_lea.hbm %s1290_s7, 128 }
 0x314   :  { %p1056_p5 = scmp.ne.s32.totalorder %s1290_s7, %s1055_s15  ;;  %p1059_p6 = scmp.lt.u32.totalorder %s1055_s15, %s1290_s7 }
 0x316   :  { %p1061_p7 = pnand %p1059_p6, %p1056_p5 }
 0x318   :  { %1064 = shalt.err (!%p1061_p7)
}
 0x319   :  { %698 = dma.vmem_to_hbm [thread:$0]  %s696_s3, 128, %s1290_s7, [#allocation4]  }
 0x31a   :  { %1073 = dma.done.wait [#allocation4], 128  }
 0x31b   :  { %1074 = vsyncadd [#allocation4], 4294967168 }
 0x31c   :  { %702 = vsyncpa [#allocation3], 1 }
 0x31d   :  { %703 = vsyncpa [#allocation6], 1 }
 0x31e   :  { %704 = vsyncpa [#allocation9], 1 }
 0x31f   :  { %705 = vsyncpa [#allocation12], 1 }
 0x320   :  { %706 = vsyncpa [#allocation4], 1 }

</bundles_post_ra>
